<compile_context>
chip_gen: v5e
topology: v5e:2x2
jax: 0.10.0
libtpu: 0.0.40
codegen_flags: <defaults>
</compile_context>

<pallas_src>
import functools

import jax
import jax.numpy as jnp
from jax.experimental import pallas as pl
from jax.experimental.pallas import tpu as pltpu


_MIB = 1024 * 1024
# Per-batch (C, HW) slab budget (f32-equivalent bytes) for the single-pass
# kernel: double-buffered in+out blocks plus f32 temps stay well inside
# v7x's 64 MiB physical / 32 MiB default-scoped VMEM.
_FUSED_SLAB_LIMIT_BYTES = 4 * _MIB
# Target bytes per (C, hw_tile) block in the two-phase (HW-tiled) fallback.
_TILE_TARGET_BYTES = 2 * _MIB
# Explicit scoped-VMEM request (safe on v5e/v6e/v7x) with headroom.
_VMEM_LIMIT_BYTES = 32 * _MIB


def _round_up(x, m):
    return (x + m - 1) // m * m


# ---------------------------------------------------------------------------
# Single-pass kernel: one (C, HW) slab per batch element.
# ---------------------------------------------------------------------------
def _se_fused_kernel(x_ref, w1t_ref, w2_ref, o_ref, *, inv_hw):
    # x_ref : (C, HW)  activations for one batch element, native dtype
    # w1t_ref: (C, Cr) = W1.T (f32);  w2_ref: (C, Cr) = W2 (f32)
    # o_ref : (C, HW)  out = x * sigmoid(relu(mean(x) @ W1.T) @ W2.T)
    x = x_ref[...]
    # Squeeze: global average pool over spatial positions (f32 accumulation).
    y = jnp.sum(x.astype(jnp.float32), axis=-1, keepdims=True) * inv_hw   # (C, 1)
    # Excite: tiny MLP on VPU/XLU (broadcast-mul + reduce), not the MXU.
    h = jnp.sum(y * w1t_ref[...], axis=0, keepdims=True)                  # (1, Cr)
    h = jnp.maximum(h, 0.0)
    s = jnp.sum(h * w2_ref[...], axis=-1, keepdims=True)                  # (C, 1)
    s = jax.nn.sigmoid(s)
    # Scale: broadcast per-channel gate over all spatial positions.
    o_ref[...] = (x * s).astype(o_ref.dtype)


# ---------------------------------------------------------------------------
# Two-phase fallback, phase 1: HW-tiled pool -> gate (B, C, 1).
# ---------------------------------------------------------------------------
def _se_gate_kernel(x_ref, w1t_ref, w2_ref, gate_ref, acc_ref, *, inv_hw):
    t = pl.program_id(1)

    @pl.when(t == 0)
    def _():
        acc_ref[...] = jnp.zeros_like(acc_ref)

    acc_ref[...] += jnp.sum(
        x_ref[...].astype(jnp.float32), axis=-1, keepdims=True)           # (C, 1)

    @pl.when(t == pl.num_programs(1) - 1)
    def _():
        y = acc_ref[...] * inv_hw                                         # (C, 1)
        h = jnp.maximum(jnp.sum(y * w1t_ref[...], axis=0, keepdims=True), 0.0)
        s = jnp.sum(h * w2_ref[...], axis=-1, keepdims=True)              # (C, 1)
        gate_ref[...] = jax.nn.sigmoid(s)


# ---------------------------------------------------------------------------
# Two-phase fallback, phase 2: HW-tiled channel-wise scaling.
# ---------------------------------------------------------------------------
def _se_scale_kernel(x_ref, gate_ref, o_ref):
    o_ref[...] = (x_ref[...] * gate_ref[...]).astype(o_ref.dtype)


@functools.partial(jax.jit,
                   static_argnames=("force_two_phase", "hw_tile", "donate_x"))
def se_layer(x, w1, w2, *, force_two_phase=False, hw_tile=None, donate_x=False):
    """SELayer.forward(x, _) — the second PyTorch argument is unused.

    x:  (B, C, H, W) float tensor (kept in its native dtype)
    w1: (C // reduction, C)  = nn.Linear(channel, channel // reduction).weight
    w2: (C, C // reduction)  = nn.Linear(channel // reduction, channel).weight
    """
    b, c, h, w = x.shape
    hw = h * w
    cr = w1.shape[0]
    itemsize = jnp.dtype(x.dtype).itemsize

    x_flat = x.reshape(b, c, hw)                     # contiguous view: free
    w1t = jnp.transpose(w1).astype(jnp.float32)      # (C, Cr)
    w2f = w2.astype(jnp.float32)                     # (C, Cr)
    inv_hw = 1.0 / float(hw)

    fused_ok = (c * hw * 4) <= _FUSED_SLAB_LIMIT_BYTES and hw_tile is None

    if fused_ok and not force_two_phase:
        # ------- Single-pass path: grid over batch, (C, HW) slab per step ---
        extra = {}
        if donate_x:
            # Reuse x's HBM buffer for the output (only if the caller donates x).
            extra["input_output_aliases"] = {0: 0}
        cost = pl.CostEstimate(
            flops=2 * b * c * hw + 4 * b * c * cr,
            transcendentals=b * c,                           # sigmoid
            bytes_accessed=2 * b * c * hw * itemsize)
        out_flat = pl.pallas_call(
            functools.partial(_se_fused_kernel, inv_hw=inv_hw),
            out_shape=jax.ShapeDtypeStruct((b, c, hw), x.dtype),
            grid=(b,),
            in_specs=[
                pl.BlockSpec((None, c, hw), lambda i: (i, 0, 0)),
                pl.BlockSpec((c, cr), lambda i: (0, 0)),
                pl.BlockSpec((c, cr), lambda i: (0, 0)),
            ],
            out_specs=pl.BlockSpec((None, c, hw), lambda i: (i, 0, 0)),
            compiler_params=pltpu.CompilerParams(
                dimension_semantics=("parallel",),
                vmem_limit_bytes=_VMEM_LIMIT_BYTES),
            cost_estimate=cost,
            **extra,
        )(x_flat, w1t, w2f)
        return out_flat.reshape(b, c, h, w)

    # ---------- Two-phase fallback: HW-tiled pool+gate, then scale ----------
    if hw_tile is None:
        t_elems = max(_TILE_TARGET_BYTES // (c * itemsize), 128)
        hw_tile = int(min(_round_up(hw, 128), (t_elems // 128) * 128))
    if hw_tile < hw:
        # Interior tiles must be lane-dense multiples of 128.
        hw_tile = max((int(hw_tile) // 128) * 128, 128)
    hw_pad = _round_up(hw, hw_tile)
    n_t = hw_pad // hw_tile
    if hw_pad != hw:
        # Zero padding does not perturb the pooled sum (we divide by true HW);
        # padded output columns are sliced off below.
        x_flat = jnp.pad(x_flat, ((0, 0), (0, 0), (0, hw_pad - hw)))

    gate = pl.pallas_call(
        functools.partial(_se_gate_kernel, inv_hw=inv_hw),
        out_shape=jax.ShapeDtypeStruct((b, c, 1), jnp.float32),
        grid=(b, n_t),
        in_specs=[
            pl.BlockSpec((None, c, hw_tile), lambda i, t: (i, 0, t)),
            pl.BlockSpec((c, cr), lambda i, t: (0, 0)),
            pl.BlockSpec((c, cr), lambda i, t: (0, 0)),
        ],
        out_specs=pl.BlockSpec((None, c, 1), lambda i, t: (i, 0, 0)),
        scratch_shapes=[pltpu.VMEM((c, 1), jnp.float32)],
        compiler_params=pltpu.CompilerParams(
            dimension_semantics=("parallel", "arbitrary"),
            vmem_limit_bytes=_VMEM_LIMIT_BYTES),
        cost_estimate=pl.CostEstimate(
            flops=b * c * hw_pad,
            transcendentals=b * c,
            bytes_accessed=b * c * hw_pad * itemsize),
    )(x_flat, w1t, w2f)

    out_flat = pl.pallas_call(
        _se_scale_kernel,
        out_shape=jax.ShapeDtypeStruct((b, c, hw_pad), x.dtype),
        grid=(b, n_t),
        in_specs=[
            pl.BlockSpec((None, c, hw_tile), lambda i, t: (i, 0, t)),
            pl.BlockSpec((None, c, 1), lambda i, t: (i, 0, 0)),
        ],
        out_specs=pl.BlockSpec((None, c, hw_tile), lambda i, t: (i, 0, t)),
        compiler_params=pltpu.CompilerParams(
            dimension_semantics=("parallel", "parallel"),
            vmem_limit_bytes=_VMEM_LIMIT_BYTES),
        cost_estimate=pl.CostEstimate(
            flops=b * c * hw_pad,
            transcendentals=0,
            bytes_accessed=2 * b * c * hw_pad * itemsize),
    )(x_flat, gate)

    if hw_pad != hw:
        out_flat = out_flat[:, :, :hw]
    return out_flat.reshape(b, c, h, w)


def _reference(x, w1, w2):
    # Pure-JAX reference mirroring the PyTorch forward exactly.
    y = jnp.mean(x.astype(jnp.float32), axis=(2, 3))            # avg_pool + view
    y = jnp.maximum(y @ w1.T.astype(jnp.float32), 0.0)          # Linear + ReLU
    y = jax.nn.sigmoid(y @ w2.T.astype(jnp.float32))            # Linear + Sigmoid
    return (x.astype(jnp.float32) * y[:, :, None, None]).astype(x.dtype)


if __name__ == "__main__":
    # Small shapes consistent with the module: channel=32, reduction=16 -> Cr=2.
    # H=W=16 gives HW=256, a lane-dense (2x128) spatial axis.
    B, C, H, W = 2, 32, 16, 16
    reduction = 16
    Cr = C // reduction

    key = jax.random.PRNGKey(0)
    kx, k1, k2, kx2 = jax.random.split(key, 4)

    x = jax.random.normal(kx, (B, C, H, W), dtype=jnp.float32)
    # nn.init.uniform(m.weight, a=0.0001, b=1e-05): the module passes a > b;
    # we draw from the [1e-5, 1e-4] span it implies.
    w1 = jax.random.uniform(k1, (Cr, C), minval=1e-5, maxval=1e-4, dtype=jnp.float32)
    w2 = jax.random.uniform(k2, (C, Cr), minval=1e-5, maxval=1e-4, dtype=jnp.float32)

    ref = _reference(x, w1, w2)

    # 1) Fused single-pass path (per-batch (C, HW) slab, grid over batch).
    out = jax.block_until_ready(se_layer(x, w1, w2))
    assert out.shape == (B, C, H, W) and out.dtype == x.dtype
    assert jnp.allclose(out, ref, atol=2e-5, rtol=2e-5), "fused path mismatch"

    # 2) Two-phase HW-tiled fallback (forced), exercising the pool accumulator.
    out2 = jax.block_until_ready(
        se_layer(x, w1, w2, force_two_phase=True, hw_tile=128))
    assert jnp.allclose(out2, ref, atol=2e-5, rtol=2e-5), "two-phase mismatch"

    # 3) Native-dtype (bf16) I/O: activations stay bf16 in HBM, pool/gate in f32.
    xb = x.astype(jnp.bfloat16)
    refb = _reference(xb, w1, w2)
    outb = jax.block_until_ready(se_layer(xb, w1, w2))
    assert outb.dtype == jnp.bfloat16
    assert jnp.allclose(outb.astype(jnp.float32), refb.astype(jnp.float32),
                        atol=2e-2, rtol=2e-2), "bf16 path mismatch"

    # 4) Non-128-multiple spatial size (HW = 144) through both paths.
    x3 = jax.random.normal(kx2, (B, C, 12, 12), dtype=jnp.float32)
    ref3 = _reference(x3, w1, w2)
    out3 = jax.block_until_ready(se_layer(x3, w1, w2))
    assert jnp.allclose(out3, ref3, atol=2e-5, rtol=2e-5), "fused HW=144 mismatch"
    out4 = jax.block_until_ready(
        se_layer(x3, w1, w2, force_two_phase=True, hw_tile=128))
    assert jnp.allclose(out4, ref3, atol=2e-5, rtol=2e-5), "two-phase HW=144 mismatch"

    print("KERNEL_OK")
</pallas_src>

<mosaic_0001>
module attributes {stable_mosaic.version = 11 : i64} {
  func.func @_se_fused_kernel(%arg0: i32, %arg1: memref<1x32x256xf32, #tpu.memory_space<vmem>>, %arg2: memref<32x2xf32, #tpu.memory_space<vmem>>, %arg3: memref<32x2xf32, #tpu.memory_space<vmem>>, %arg4: memref<1x32x256xf32, #tpu.memory_space<vmem>>) attributes {dimension_semantics = [#tpu.dimension_semantics<parallel>], iteration_bounds = array<i64: 2>, scalar_prefetch = 0 : i64, scratch_operands = 0 : i64, tpu.core_type = #tpu.core_type<tc>, window_params = [{transform_indices = @transform_0, window_bounds = array<i64: 1, 32, 256>}, {pipeline_mode = #tpu.pipeline_mode<synchronous>, transform_indices = @transform_1, window_bounds = array<i64: 32, 2>}, {pipeline_mode = #tpu.pipeline_mode<synchronous>, transform_indices = @transform_2, window_bounds = array<i64: 32, 2>}, {transform_indices = @transform_3, window_bounds = array<i64: 1, 32, 256>}]} {
    %c0 = arith.constant 0 : index
    %c0_0 = arith.constant 0 : index
    %c0_1 = arith.constant 0 : index
    %0 = vector.load %arg1[%c0, %c0_0, %c0_1] : memref<1x32x256xf32, #tpu.memory_space<vmem>>, vector<1x32x256xf32>
    %1 = vector.shape_cast %0 : vector<1x32x256xf32> to vector<32x256xf32>
    %cst = arith.constant dense<0.000000e+00> : vector<32xf32>
    %2 = vector.multi_reduction <add>, %1, %cst [1] : vector<32x256xf32> to vector<32xf32>
    %3 = vector.shape_cast %2 : vector<32xf32> to vector<32x1xf32>
    %cst_2 = arith.constant 3.906250e-03 : f32
    %4 = vector.broadcast %cst_2 : f32 to vector<32x1xf32>
    %5 = arith.mulf %3, %4 : vector<32x1xf32>
    %c0_3 = arith.constant 0 : index
    %c0_4 = arith.constant 0 : index
    %6 = vector.load %arg2[%c0_3, %c0_4] : memref<32x2xf32, #tpu.memory_space<vmem>>, vector<32x2xf32>
    %7 = vector.broadcast %5 : vector<32x1xf32> to vector<32x2xf32>
    %8 = arith.mulf %7, %6 : vector<32x2xf32>
    %cst_5 = arith.constant dense<0.000000e+00> : vector<2xf32>
    %9 = vector.multi_reduction <add>, %8, %cst_5 [0] : vector<32x2xf32> to vector<2xf32>
    %10 = vector.shape_cast %9 : vector<2xf32> to vector<1x2xf32>
    %cst_6 = arith.constant 0.000000e+00 : f32
    %11 = vector.broadcast %cst_6 : f32 to vector<1x2xf32>
    %12 = arith.maximumf %10, %11 : vector<1x2xf32>
    %c0_7 = arith.constant 0 : index
    %c0_8 = arith.constant 0 : index
    %13 = vector.load %arg3[%c0_7, %c0_8] : memref<32x2xf32, #tpu.memory_space<vmem>>, vector<32x2xf32>
    %14 = vector.broadcast %12 : vector<1x2xf32> to vector<32x2xf32>
    %15 = arith.mulf %14, %13 : vector<32x2xf32>
    %cst_9 = arith.constant dense<0.000000e+00> : vector<32xf32>
    %16 = vector.multi_reduction <add>, %15, %cst_9 [1] : vector<32x2xf32> to vector<32xf32>
    %17 = vector.shape_cast %16 : vector<32xf32> to vector<32x1xf32>
    %18 = arith.negf %17 : vector<32x1xf32>
    %19 = math.exp %18 : vector<32x1xf32>
    %cst_10 = arith.constant 1.000000e+00 : f32
    %20 = vector.broadcast %cst_10 : f32 to vector<32x1xf32>
    %21 = arith.addf %20, %19 : vector<32x1xf32>
    %22 = arith.divf %20, %21 : vector<32x1xf32>
    %23 = vector.broadcast %22 : vector<32x1xf32> to vector<32x256xf32>
    %24 = arith.mulf %1, %23 : vector<32x256xf32>
    %c0_11 = arith.constant 0 : index
    %c0_12 = arith.constant 0 : index
    %c0_13 = arith.constant 0 : index
    %25 = vector.load %arg4[%c0_11, %c0_12, %c0_13] : memref<1x32x256xf32, #tpu.memory_space<vmem>>, vector<1x32x256xf32>
    %26 = vector.shape_cast %25 : vector<1x32x256xf32> to vector<32x256xf32>
    %27 = vector.shape_cast %24 : vector<32x256xf32> to vector<1x32x256xf32>
    tpu.vector_store %arg4[%c0_11, %c0_12, %c0_13], %27 {strides = array<i32>} : memref<1x32x256xf32, #tpu.memory_space<vmem>>, vector<1x32x256xf32>,
    return
  }
  func.func @transform_0(%arg0: i32) -> (i32, i32, i32) {
    %c0_i32 = arith.constant 0 : i32
    %c0_i32_0 = arith.constant 0 : i32
    %c0_i32_1 = arith.constant 0 : i32
    return %arg0, %c0_i32, %c0_i32_0 : i32, i32, i32
  }
  func.func @transform_1(%arg0: i32) -> (i32, i32) {
    %c0_i32 = arith.constant 0 : i32
    %c0_i32_0 = arith.constant 0 : i32
    %c0_i32_1 = arith.constant 0 : i32
    return %c0_i32, %c0_i32_0 : i32, i32
  }
  func.func @transform_2(%arg0: i32) -> (i32, i32) {
    %c0_i32 = arith.constant 0 : i32
    %c0_i32_0 = arith.constant 0 : i32
    %c0_i32_1 = arith.constant 0 : i32
    return %c0_i32, %c0_i32_0 : i32, i32
  }
  func.func @transform_3(%arg0: i32) -> (i32, i32, i32) {
    %c0_i32 = arith.constant 0 : i32
    %c0_i32_0 = arith.constant 0 : i32
    %c0_i32_1 = arith.constant 0 : i32
    return %arg0, %c0_i32, %c0_i32_0 : i32, i32, i32
  }
}

</mosaic_0001>

<bundles_post_ra>
// kernel: se_layer.1
= control target key start
LH: loop header
LB: loop body
LE: loop exit
PB: predicated region body
PF: predicated region fallthrough
CT: control target
= control target key end

     0   :  { %s454_s12 = smov 0   ;;  %s559_s0 = inlined_call_operand.vmem [shape: f32[2,32,256], index: 0, kind: input, shape index: {}]   ;;  %s560_s1 = inlined_call_operand.vmem [shape: f32[32,2], index: 1, kind: input, shape index: {}]   ;;  %s561_s2 = inlined_call_operand.vmem [shape: f32[32,2], index: 2, kind: input, shape index: {}]   ;;  %s562_s3 = inlined_call_operand.vmem [shape: f32[2,32,256], index: 3, kind: output, shape index: {}]  }
   0x1 LB: > { %s385_s13 = sadd.s32 4294967295, %s432_s12   ;;  %p389_p0 = scmp.ge.s32.totalorder %s432_s12, 1  ;;  %s432_s12 = sphi %s454_s12, %s13_s12  }
   0x2   : > { %p137_p1 = scmp.lt.s32.totalorder %s432_s12, 3 }
   0x4   : > { %p138_p2 = pnand %p389_p0, %p137_p1 }
   0x5   : > { %p161_p3 = scmp.lt.s32.totalorder (!%p138_p2), %s385_s13, 1 }
   0x6   : > { %141 = sbr.rel (%p138_p2) target bundleno = 328 (0x148), region = 32 }
   0xb   : > { %s564_s13 = smov (!%p161_p3, %s385_s13), 1  ;;  %v195_v15 = vld [vmem:[%s560_s1] sm:$0xff]  ;;  %v197_v17 = vld [vmem:[%s560_s1 + $0x10] sm:$0xff]  ;;  %v196_v18 = vld [vmem:[%s560_s1 + $0x8] sm:$0xff]  ;;  %vm203_vm0 = vcmask 15360  }
   0xc   : > { %s400_s14 = sshll.u32 %s564_s13, 6  ;;  %v198_v22 = vld [vmem:[%s560_s1 + $0x18] sm:$0xff]  ;;  %v220_v42 = vld [vmem:[%s561_s2 + $0x10] sm:$0xff]  ;;  %v218_v43 = vld [vmem:[%s561_s2] sm:$0xff] }
   0xd   : > { %s165_s17 = scalar_lea.vmem %s559_s0, %s400_s14  ;;  %v221_v41 = vld [vmem:[%s561_s2 + $0x18] sm:$0xff]  ;;  %v219_v51 = vld [vmem:[%s561_s2 + $0x8] sm:$0xff]  ;;  %s534_s9 = scalar_lea.vmem %s562_s3, %s400_s14 }
   0xe   : > { %v470_v0 = vld [vmem:[%s165_s17] sm:$0xff]  ;;  %v472_v1 = vld [vmem:[%s165_s17 + $0x8] sm:$0xff]  ;;  %v482_v6 = vld [vmem:[%s165_s17 + $0x10] sm:$0xff] }
   0xf   : > { %v474_v2 = vld [vmem:[%s165_s17 + $0x20] sm:$0xff]  ;;  %v179_v3 = vadd.f32 %v472_v1, %v470_v0  ;;  %v478_v4 = vld [vmem:[%s165_s17 + $0x28] sm:$0xff]  ;;  %v484_v7 = vld [vmem:[%s165_s17 + $0x18] sm:$0xff] }
  0x10   : > { %v185_v5 = vadd.f32 %v478_v4, %v474_v2  ;;  %v486_v8 = vld [vmem:[%s165_s17 + $0x30] sm:$0xff]  ;;  %v488_v9 = vld [vmem:[%s165_s17 + $0x38] sm:$0xff]  ;;  %v182_v10 = vadd.f32 %v484_v7, %v482_v6 }
  0x11   : > { %180 = vadd.xlane.f32.xlu0 %v179_v3  ;;  %v188_v11 = vadd.f32 %v488_v9, %v486_v8 }
  0x12   : > { %186 = vadd.xlane.f32.xlu1 %v185_v5 }
  0x19   : > { %183 = vadd.xlane.f32.xlu0 %v182_v10 }
  0x1a   : > { %189 = vadd.xlane.f32.xlu1 %v188_v11 }
  0x84   : > { %v181_v12 = vpop.xlane.xlu0 %180 }
  0x85   : > { %v187_v13 = vpop.xlane.xlu1 %186  ;;  %v191_v14 = vmul.f32 0.00390625, %v181_v12 }
  0x86   : > { %v193_v16 = vmul.f32 0.00390625, %v187_v13 }
  0x87   : > { %v199_v20 = vmul.f32 %v195_v15, %v191_v14 }
  0x88   : > { %v201_v25 = vmul.f32 %v197_v17, %v193_v16 }
  0x89   : > { %v204_v28 = vsel %vm203_vm0, %v199_v20, 0.0 }
  0x8a   : > { %v207_v31 = vsel %vm203_vm0, %v201_v25, 0.0 }
  0x8c   : > { %v184_v19 = vpop.xlane.xlu0 %183 }
  0x8d   : > { %v192_v21 = vmul.f32 0.00390625, %v184_v19  ;;  %v190_v23 = vpop.xlane.xlu1 %189 }
  0x8e   : > { %v194_v24 = vmul.f32 0.00390625, %v190_v23 }
  0x8f   : > { %v200_v26 = vmul.f32 %v196_v18, %v192_v21 }
  0x90   : > { %v202_v27 = vmul.f32 %v198_v22, %v194_v24 }
  0x91   : > { %v205_v29 = vsel %vm203_vm0, %v200_v26, 0.0 }
  0x92   : > { %v206_v30 = vadd.f32 %v205_v29, %v204_v28  ;;  %v209_v32 = vsel %vm203_vm0, %v202_v27, 0.0 }
  0x94   : > { %v208_v33 = vadd.f32 %v207_v31, %v206_v30 }
  0x96   : > { %v210_v34 = vadd.f32 %v209_v32, %v208_v33 }
  0x98   : > { %v211_v35 = vrot.slane %v210_v34, 4 }
  0x9a   : > { %v212_v36 = vadd.f32 %v211_v35, %v210_v34 }
  0x9c   : > { %v213_v37 = vrot.slane %v212_v36, 2 }
  0x9e   : > { %v214_v38 = vadd.f32 %v213_v37, %v212_v36 }
  0xa0   : > { %v215_v39 = vrot.slane %v214_v38, 1 }
  0xa2   : > { %v216_v40 = vadd.f32 %v215_v39, %v214_v38 }
  0xa4   : > { %v217_v44 = vmax.f32 %v216_v40, 0.0 }
  0xa6   : > { %v225_v45 = vmul.f32 %v221_v41, %v217_v44  ;;  %v224_v46 = vmul.f32 %v220_v42, %v217_v44  ;;  %v222_v47 = vmul.f32 %v218_v43, %v217_v44  ;;  %v223_v52 = vmul.f32 %v219_v51, %v217_v44 }
  0xa8   : > { %v235_v48 = vsel %vm203_vm0, %v225_v45, 0.0  ;;  %v232_v49 = vsel %vm203_vm0, %v224_v46, 0.0  ;;  %v226_v50 = vsel %vm203_vm0, %v222_v47, 0.0  ;;  %v229_v53 = vsel %vm203_vm0, %v223_v52, 0.0 }
  0xa9   : > { %236 = vadd.xlane.f32.xlu1 %v235_v48  ;;  %233 = vadd.xlane.f32.xlu0 %v232_v49 }
  0xaa   : > { %227 = vadd.xlane.f32.xlu2 %v226_v50 }
  0xb2   : > { %230 = vadd.xlane.f32.xlu2 %v229_v53 }
 0x11c   : > { %v237_v54 = vpop.xlane.xlu1 %236  ;;  %v234_v55 = vpop.xlane.xlu0 %233 }
 0x11d   : > { %v397_v56 = vmul.f32 -1.442695, %v237_v54  ;;  %v396_v57 = vmul.f32 -1.442695, %v234_v55  ;;  %v228_v58 = vpop.xlane.xlu2 %227 }
 0x11e   : > { %v394_v59 = vmul.f32 -1.442695, %v228_v58 }
 0x11f   : > { %410 = vpow2.f32 %v397_v56 }
 0x120   : > { %412 = vpow2.f32 %v396_v57 }
 0x121   : > { %414 = vpow2.f32 %v394_v59 }
 0x125   : > { %v411_v60 = vpop.eup %410  ;;  %v231_v61 = vpop.xlane.xlu2 %230 }
 0x126   : > { %v413_v62 = vpop.eup %412  ;;  %v253_v63 = vadd.f32 1.0, %v411_v60  ;;  %v395_v3 = vmul.f32 -1.442695, %v231_v61 }
 0x127   : > { %v415_v5 = vpop.eup %414  ;;  %v252_v10 = vadd.f32 1.0, %v413_v62 }
 0x128   : > { %416 = vrcp.f32 %v253_v63  ;;  %v250_v11 = vadd.f32 1.0, %v415_v5  ;;  %v308_v18 = vand.u32 2147483647, %v253_v63  ;;  %v310_v21 = vand.u32 2147483648, %v253_v63 }
 0x129   : > { %418 = vrcp.f32 %v252_v10  ;;  %v295_v23 = vand.u32 2147483648, %v252_v10  ;;  %vm304_vm2 = vweird.f32 %v253_v63  ;;  %v293_v27 = vand.u32 2147483647, %v252_v10 }
 0x12a   : > { %420 = vpow2.f32 %v395_v3  ;;  %vm309_vm4 = vcmp.eq.f32.partialorder %v308_v18, 8.507059e+37  ;;  %vm289_vm5 = vweird.f32 %v252_v10  ;;  %v311_v30 = vor.u32 1.1754944e-38, %v310_v21 }
 0x12b   : > { %422 = vrcp.f32 %v250_v11  ;;  %v296_v32 = vor.u32 1.1754944e-38, %v295_v23  ;;  %v265_v33 = vand.u32 2147483648, %v250_v11  ;;  %v263_v36 = vand.u32 2147483647, %v250_v11 }
 0x12c   : > { %vm294_vm9 = vcmp.eq.f32.partialorder %v293_v27, 8.507059e+37  ;;  %vm259_vm10 = vweird.f32 %v250_v11 }
 0x12d   : > { %v266_v46 = vor.u32 1.1754944e-38, %v265_v33  ;;  %vm264_vm12 = vcmp.eq.f32.partialorder %v263_v36, 8.507059e+37 }
 0x12e   : > { %v417_v12 = vpop.eup %416 }
 0x12f   : > { %v419_v13 = vpop.eup %418  ;;  %v300_v14 = vmul.f32 %v417_v12, %v253_v63  ;;  %vm305_vm1 = vweird.f32 %v417_v12 }
 0x130   : > { %v421_v15 = vpop.eup %420  ;;  %v285_v16 = vmul.f32 %v419_v13, %v252_v10  ;;  %vm290_vm3 = vweird.f32 %v419_v13  ;;  %vm306_vm6 = vmor %vm304_vm2, %vm305_vm1 }
 0x131   : > { %v301_v17 = vsub.f32 1.0, %v300_v14  ;;  %v526_v19 = vadd.f32 1.0, %v421_v15  ;;  %v423_v20 = vpop.eup %422  ;;  %vm291_vm7 = vmor %vm289_vm5, %vm290_vm3 }
 0x132   : > { %v286_v22 = vsub.f32 1.0, %v285_v16  ;;  %v255_v25 = vmul.f32 %v423_v20, %v250_v11  ;;  %vm260_vm8 = vweird.f32 %v423_v20 }
 0x133   : > { %v302_v24 = vmul.f32 %v417_v12, %v301_v17  ;;  %424 = vrcp.f32 %v526_v19  ;;  %vm261_vm11 = vmor %vm259_vm10, %vm260_vm8  ;;  %v278_v51 = vand.u32 2147483647, %v526_v19  ;;  %vm274_vm14 = vweird.f32 %v526_v19 }
 0x134   : > { %v287_v26 = vmul.f32 %v419_v13, %v286_v22  ;;  %v256_v29 = vsub.f32 1.0, %v255_v25 }
 0x135   : > { %v303_v28 = vadd.f32 %v417_v12, %v302_v24  ;;  %vm279_vm0 = vcmp.eq.f32.partialorder %v278_v51, 8.507059e+37 }
 0x136   : > { %v288_v31 = vadd.f32 %v419_v13, %v287_v26  ;;  %v257_v35 = vmul.f32 %v423_v20, %v256_v29 }
 0x137   : > { %v307_v34 = vsel %vm306_vm6, %v417_v12, %v303_v28 }
 0x138   : > { %v312_v37 = vsel %vm309_vm4, %v311_v30, %v307_v34  ;;  %v292_v38 = vsel %vm291_vm7, %v419_v13, %v288_v31  ;;  %v258_v43 = vadd.f32 %v423_v20, %v257_v35 }
 0x139   : > { %v425_v39 = vpop.eup %424  ;;  %v320_v40 = vmul.f32 %v312_v37, %v486_v8  ;;  %v321_v41 = vmul.f32 %v312_v37, %v488_v9  ;;  %v297_v42 = vsel %vm294_vm9, %v296_v32, %v292_v38 }
 0x13a   : > { %v318_v44 = vmul.f32 %v297_v42, %v474_v2  ;;  %v319_v45 = vmul.f32 %v297_v42, %v478_v4  ;;  %v270_v47 = vmul.f32 %v425_v39, %v526_v19  ;;  %v262_v48 = vsel %vm261_vm11, %v423_v20, %v258_v43 }
 0x13b   : > { %328 = vst [vmem:[%s534_s9 + $0x30] sm:$0xff] %v320_v40  ;;  %v267_v8 = vsel %vm264_vm12, %v266_v46, %v262_v48  ;;  %v280_v2 = vand.u32 2147483648, %v526_v19  ;;  %vm275_vm13 = vweird.f32 %v425_v39 }
 0x13c   : > { %329 = vst [vmem:[%s534_s9 + $0x38] sm:$0xff] %v321_v41  ;;  %v271_v49 = vsub.f32 1.0, %v270_v47  ;;  %v314_v9 = vmul.f32 %v267_v8, %v470_v0  ;;  %v315_v50 = vmul.f32 %v267_v8, %v472_v1  ;;  %vm276_vm15 = vmor %vm274_vm14, %vm275_vm13 }
 0x13d   : > { %326 = vst [vmem:[%s534_s9 + $0x20] sm:$0xff] %v318_v44  ;;  %v281_v53 = vor.u32 1.1754944e-38, %v280_v2 }
 0x13e   : > { %327 = vst [vmem:[%s534_s9 + $0x28] sm:$0xff] %v319_v45  ;;  %v272_v4 = vmul.f32 %v425_v39, %v271_v49 }
 0x13f   : > { %322 = vst [vmem:[%s534_s9] sm:$0xff] %v314_v9 }
 0x140   : > { %323 = vst [vmem:[%s534_s9 + $0x8] sm:$0xff] %v315_v50  ;;  %v273_v52 = vadd.f32 %v425_v39, %v272_v4 }
 0x142   : > { %v277_v54 = vsel %vm276_vm15, %v425_v39, %v273_v52 }
 0x143   : > { %v282_v0 = vsel %vm279_vm0, %v281_v53, %v277_v54 }
 0x144   : > { %v316_v1 = vmul.f32 %v282_v0, %v482_v6  ;;  %v317_v55 = vmul.f32 %v282_v0, %v484_v7 }
 0x146   : > { %324 = vst [vmem:[%s534_s9 + $0x10] sm:$0xff] %v316_v1 }
 0x147   : > { %325 = vst [vmem:[%s534_s9 + $0x18] sm:$0xff] %v317_v55 }
 0x148 PF: > { %s13_s12 = sadd.s32 1, %s432_s12  }
 0x149   : > { %p10_p4 = scmp.ge.s32.totalorder %s13_s12, 4  }
 0x14b   :  { %12 = sbr.rel (!%p10_p4) target bundleno = 1 (0x1), region = 62 }

</bundles_post_ra>
